<compile_context>
chip_gen: v7x
topology: tpu7x:2x2x1
jax: 0.10.0
libtpu: 0.0.40
codegen_flags: <defaults>
</compile_context>

<pallas_src>
import math

import jax
import jax.numpy as jnp
from jax import lax
from jax.experimental import pallas as pl
from jax.experimental.pallas import tpu as pltpu


def _round_up(n, m):
    return (n + m - 1) // m * m


def _mlp_kernel(x_ref, w1_ref, b1_ref, w2_ref, b2_ref, w3t_ref, b3_ref, o_ref):
    """Fused Linear->ReLU->Linear->ReLU->Linear->Sigmoid for one batch tile.

    x_ref:   (TB, D)     compute dtype (f32 or bf16)
    w1_ref:  (D, L1p)    compute dtype
    b1_ref:  (1, L1p)    f32
    w2_ref:  (L1p, L2p)  compute dtype
    b2_ref:  (1, L2p)    f32
    w3t_ref: (1, L2p)    compute dtype (3rd-layer weight, pre-transposed)
    b3_ref:  (1, 1)      f32 scalar in SMEM
    o_ref:   (1, TB)     f32 (lane-dense output row)
    """
    x = x_ref[...]

    # Layer 1: Linear + ReLU (MXU matmul, f32 accumulation; elementwise in f32)
    h1 = jnp.dot(x, w1_ref[...], preferred_element_type=jnp.float32)
    h1 = jnp.maximum(h1 + b1_ref[...], 0.0)                      # (TB, L1p) f32

    # Layer 2: Linear + ReLU
    h2 = jnp.dot(h1.astype(w2_ref.dtype), w2_ref[...],
                 preferred_element_type=jnp.float32)
    h2 = jnp.maximum(h2 + b2_ref[...], 0.0)                      # (TB, L2p) f32

    # Layer 3: contract w3^T (1, L2p) against h2's feature dim (TB, L2p)
    # -> (1, TB).  Keeps the batch on the lane axis so the output store is
    # lane-dense (no per-row masked stores of a (TB, 1) column).
    zt = lax.dot_general(
        w3t_ref[...], h2.astype(w3t_ref.dtype),
        dimension_numbers=(((1,), (1,)), ((), ())),
        preferred_element_type=jnp.float32)                      # (1, TB)
    zt = zt + b3_ref[0, 0]
    o_ref[...] = jax.nn.sigmoid(zt).astype(o_ref.dtype)


def botdata_mlp_forward(x, params, *, batch_tile=1024, compute_dtype=None):
    """Fused MLP forward.

    x: (B, D) float32. params: dict with w{1,2,3} stored as (in, out) and
    b{1,2,3} stored as (1, out).  compute_dtype optionally bf16 to halve the
    HBM traffic of x / weights (accumulation and elementwise stay f32).
    """
    B, D = x.shape
    if compute_dtype is None:
        compute_dtype = x.dtype
    compute_dtype = jnp.dtype(compute_dtype)

    L1 = params["w1"].shape[1]
    L2 = params["w2"].shape[1]
    # Pad hidden dims to a full 128-lane multiple (zero padding -> exact).
    L1p = _round_up(L1, 128)
    L2p = _round_up(L2, 128)

    # Batch tile: multiple of 128 so the lane-dense output block is unmasked.
    bt = _round_up(min(batch_tile, _round_up(B, 128)), 128)
    num_tiles = pl.cdiv(B, bt)
    B_pad = num_tiles * bt

    x_p = x
    if B_pad != B:
        x_p = jnp.pad(x_p, ((0, B_pad - B), (0, 0)))
    x_p = x_p.astype(compute_dtype)

    w1 = jnp.pad(params["w1"], ((0, 0), (0, L1p - L1))).astype(compute_dtype)
    b1 = jnp.pad(params["b1"], ((0, 0), (0, L1p - L1))).astype(jnp.float32)
    w2 = jnp.pad(params["w2"],
                 ((0, L1p - L1), (0, L2p - L2))).astype(compute_dtype)
    b2 = jnp.pad(params["b2"], ((0, 0), (0, L2p - L2))).astype(jnp.float32)
    w3t = jnp.pad(params["w3"].T, ((0, 0), (0, L2p - L2))).astype(compute_dtype)
    b3 = params["b3"].astype(jnp.float32)                        # (1, 1)

    itemsize = compute_dtype.itemsize
    flops = 2 * B_pad * (D * L1p + L1p * L2p + L2p)
    bytes_accessed = int(
        x_p.size * itemsize
        + (w1.size + w2.size + w3t.size) * itemsize
        + (b1.size + b2.size + b3.size) * 4
        + B_pad * 4)
    cost = pl.CostEstimate(flops=flops, transcendentals=B_pad,
                           bytes_accessed=bytes_accessed)

    out = pl.pallas_call(
        _mlp_kernel,
        out_shape=jax.ShapeDtypeStruct((1, B_pad), jnp.float32),
        grid_spec=pltpu.PrefetchScalarGridSpec(
            num_scalar_prefetch=0,
            grid=(num_tiles,),
            in_specs=[
                # x: tiled over batch.
                pl.BlockSpec((bt, D), lambda i: (i, 0)),
                # Weights / vector biases: full arrays, resident every step.
                pl.BlockSpec((D, L1p), lambda i: (0, 0)),
                pl.BlockSpec((1, L1p), lambda i: (0, 0)),
                pl.BlockSpec((L1p, L2p), lambda i: (0, 0)),
                pl.BlockSpec((1, L2p), lambda i: (0, 0)),
                pl.BlockSpec((1, L2p), lambda i: (0, 0)),        # w3^T
                # b3 scalar lives in SMEM (no pointless (8,128) VMEM tile DMA).
                pl.BlockSpec(memory_space=pltpu.MemorySpace.SMEM),
            ],
            out_specs=pl.BlockSpec((1, bt), lambda i: (0, i)),
        ),
        compiler_params=pltpu.CompilerParams(
            dimension_semantics=("parallel",),
        ),
        cost_estimate=cost,
    )(x_p, w1, b1, w2, b2, w3t, b3)

    return out[0, :B].reshape(B, 1)


def init_params(key, botdata_tensor_size, l1_size=None, l2_size=None):
    """Deterministic init mirroring nn.Linear's U(-1/sqrt(fan_in), 1/sqrt(fan_in)).

    Weights are stored as (in_features, out_features) for the kernel.
    """
    if l1_size is None:
        l1_size = botdata_tensor_size // 2
    if l2_size is None:
        l2_size = l1_size // 2

    dims = [(botdata_tensor_size, l1_size), (l1_size, l2_size), (l2_size, 1)]
    params = {}
    for idx, (fan_in, fan_out) in enumerate(dims, start=1):
        key, kw, kb = jax.random.split(key, 3)
        bound = 1.0 / math.sqrt(fan_in)
        params[f"w{idx}"] = jax.random.uniform(
            kw, (fan_in, fan_out), jnp.float32, minval=-bound, maxval=bound)
        params[f"b{idx}"] = jax.random.uniform(
            kb, (1, fan_out), jnp.float32, minval=-bound, maxval=bound)
    return params


def reference_forward(x, params):
    """Pure-JAX reference (matches the PyTorch forward semantics)."""
    h1 = jnp.maximum(x @ params["w1"] + params["b1"], 0.0)
    h2 = jnp.maximum(h1 @ params["w2"] + params["b2"], 0.0)
    return jax.nn.sigmoid(h2 @ params["w3"] + params["b3"])


if __name__ == "__main__":
    key = jax.random.PRNGKey(0)
    key, kx = jax.random.split(key)

    B = 8                      # batch (wrapper pads to the 128-row tile)
    D = 32                     # botdata_tensor_size -> l1=16, l2=8

    params = init_params(key, D)
    x = jax.random.normal(kx, (B, D), jnp.float32)

    ref = reference_forward(x, params)

    # f32 path: exact (zero-padded features contribute exactly 0).
    out = jax.block_until_ready(botdata_mlp_forward(x, params))
    assert out.shape == (B, 1), out.shape
    assert jnp.allclose(out, ref, atol=1e-5, rtol=1e-5), (out, ref)

    # bf16 inputs/weights (halves dominant HBM stream); f32 accumulation and
    # f32 elementwise keep the sigmoid output within bf16 rounding of the ref.
    out_bf16 = jax.block_until_ready(
        botdata_mlp_forward(x, params, compute_dtype=jnp.bfloat16))
    assert out_bf16.shape == (B, 1), out_bf16.shape
    assert jnp.allclose(out_bf16, ref, atol=5e-2), (out_bf16, ref)

    print("KERNEL_OK")
</pallas_src>

<mosaic_0001>
module attributes {stable_mosaic.version = 11 : i64} {
  func.func @_mlp_kernel(%arg0: i32, %arg1: memref<128x32xf32, #tpu.memory_space<vmem>>, %arg2: memref<32x128xf32, #tpu.memory_space<vmem>>, %arg3: memref<1x128xf32, #tpu.memory_space<vmem>>, %arg4: memref<128x128xf32, #tpu.memory_space<vmem>>, %arg5: memref<1x128xf32, #tpu.memory_space<vmem>>, %arg6: memref<1x128xf32, #tpu.memory_space<vmem>>, %arg7: memref<1x1xf32, #tpu.memory_space<smem>>, %arg8: memref<1x128xf32, #tpu.memory_space<vmem>>) attributes {dimension_semantics = [#tpu.dimension_semantics<parallel>], iteration_bounds = array<i64: 1>, scalar_prefetch = 0 : i64, scratch_operands = 0 : i64, tpu.core_type = #tpu.core_type<tc>, window_params = [{transform_indices = @transform_0, window_bounds = array<i64: 128, 32>}, {pipeline_mode = #tpu.pipeline_mode<synchronous>, transform_indices = @transform_1, window_bounds = array<i64: 32, 128>}, {pipeline_mode = #tpu.pipeline_mode<synchronous>, transform_indices = @transform_2, window_bounds = array<i64: 1, 128>}, {pipeline_mode = #tpu.pipeline_mode<synchronous>, transform_indices = @transform_3, window_bounds = array<i64: 128, 128>}, {pipeline_mode = #tpu.pipeline_mode<synchronous>, transform_indices = @transform_4, window_bounds = array<i64: 1, 128>}, {pipeline_mode = #tpu.pipeline_mode<synchronous>, transform_indices = @transform_5, window_bounds = array<i64: 1, 128>}, {transform_indices = @transform_6, window_bounds = array<i64: 1, 1>}, {transform_indices = @transform_7, window_bounds = array<i64: 1, 128>}]} {
    %c0 = arith.constant 0 : index
    %c0_0 = arith.constant 0 : index
    %0 = vector.load %arg1[%c0, %c0_0] : memref<128x32xf32, #tpu.memory_space<vmem>>, vector<128x32xf32>
    %c0_1 = arith.constant 0 : index
    %c0_2 = arith.constant 0 : index
    %1 = vector.load %arg2[%c0_1, %c0_2] : memref<32x128xf32, #tpu.memory_space<vmem>>, vector<32x128xf32>
    %cst = arith.constant dense<0.000000e+00> : vector<128x128xf32>
    %2 = tpu.matmul %0, %1, %cst {dimension_numbers = #tpu.dot_dimension_numbers<[1], [0], [0], [1], [0, 0, 1, 1], [], []>} : vector<128x32xf32>, vector<32x128xf32>, vector<128x128xf32> -> vector<128x128xf32>
    %c0_3 = arith.constant 0 : index
    %c0_4 = arith.constant 0 : index
    %3 = vector.load %arg3[%c0_3, %c0_4] : memref<1x128xf32, #tpu.memory_space<vmem>>, vector<1x128xf32>
    %4 = vector.broadcast %3 : vector<1x128xf32> to vector<128x128xf32>
    %5 = arith.addf %2, %4 : vector<128x128xf32>
    %cst_5 = arith.constant 0.000000e+00 : f32
    %6 = vector.broadcast %cst_5 : f32 to vector<128x128xf32>
    %7 = arith.maximumf %5, %6 : vector<128x128xf32>
    %c0_6 = arith.constant 0 : index
    %c0_7 = arith.constant 0 : index
    %8 = vector.load %arg4[%c0_6, %c0_7] : memref<128x128xf32, #tpu.memory_space<vmem>>, vector<128x128xf32>
    %cst_8 = arith.constant dense<0.000000e+00> : vector<128x128xf32>
    %9 = tpu.matmul %7, %8, %cst_8 {dimension_numbers = #tpu.dot_dimension_numbers<[1], [0], [0], [1], [0, 0, 1, 1], [], []>} : vector<128x128xf32>, vector<128x128xf32>, vector<128x128xf32> -> vector<128x128xf32>
    %c0_9 = arith.constant 0 : index
    %c0_10 = arith.constant 0 : index
    %10 = vector.load %arg5[%c0_9, %c0_10] : memref<1x128xf32, #tpu.memory_space<vmem>>, vector<1x128xf32>
    %11 = vector.broadcast %10 : vector<1x128xf32> to vector<128x128xf32>
    %12 = arith.addf %9, %11 : vector<128x128xf32>
    %cst_11 = arith.constant 0.000000e+00 : f32
    %13 = vector.broadcast %cst_11 : f32 to vector<128x128xf32>
    %14 = arith.maximumf %12, %13 : vector<128x128xf32>
    %c0_12 = arith.constant 0 : index
    %c0_13 = arith.constant 0 : index
    %15 = vector.load %arg6[%c0_12, %c0_13] : memref<1x128xf32, #tpu.memory_space<vmem>>, vector<1x128xf32>
    %cst_14 = arith.constant dense<0.000000e+00> : vector<1x128xf32>
    %16 = tpu.matmul %15, %14, %cst_14 {dimension_numbers = #tpu.dot_dimension_numbers<[1], [1], [0], [0], [0, 0, 1, 0], [], []>} : vector<1x128xf32>, vector<128x128xf32>, vector<1x128xf32> -> vector<1x128xf32>
    %c0_15 = arith.constant 0 : index
    %c0_16 = arith.constant 0 : index
    %17 = memref.load %arg7[%c0_15, %c0_16] : memref<1x1xf32, #tpu.memory_space<smem>>
    %18 = vector.broadcast %17 : f32 to vector<1x128xf32>
    %19 = arith.addf %16, %18 : vector<1x128xf32>
    %20 = arith.negf %19 : vector<1x128xf32>
    %21 = math.exp %20 : vector<1x128xf32>
    %cst_17 = arith.constant 1.000000e+00 : f32
    %22 = vector.broadcast %cst_17 : f32 to vector<1x128xf32>
    %23 = arith.addf %22, %21 : vector<1x128xf32>
    %24 = arith.divf %22, %23 : vector<1x128xf32>
    %c0_18 = arith.constant 0 : index
    %c0_19 = arith.constant 0 : index
    %25 = vector.load %arg8[%c0_18, %c0_19] : memref<1x128xf32, #tpu.memory_space<vmem>>, vector<1x128xf32>
    tpu.vector_store %arg8[%c0_18, %c0_19], %24 {strides = array<i32>} : memref<1x128xf32, #tpu.memory_space<vmem>>, vector<1x128xf32>,
    return
  }
  func.func @transform_0(%arg0: i32) -> (i32, i32) {
    %c0_i32 = arith.constant 0 : i32
    %c0_i32_0 = arith.constant 0 : i32
    return %arg0, %c0_i32 : i32, i32
  }
  func.func @transform_1(%arg0: i32) -> (i32, i32) {
    %c0_i32 = arith.constant 0 : i32
    %c0_i32_0 = arith.constant 0 : i32
    %c0_i32_1 = arith.constant 0 : i32
    return %c0_i32, %c0_i32_0 : i32, i32
  }
  func.func @transform_2(%arg0: i32) -> (i32, i32) {
    %c0_i32 = arith.constant 0 : i32
    %c0_i32_0 = arith.constant 0 : i32
    %c0_i32_1 = arith.constant 0 : i32
    return %c0_i32, %c0_i32_0 : i32, i32
  }
  func.func @transform_3(%arg0: i32) -> (i32, i32) {
    %c0_i32 = arith.constant 0 : i32
    %c0_i32_0 = arith.constant 0 : i32
    %c0_i32_1 = arith.constant 0 : i32
    return %c0_i32, %c0_i32_0 : i32, i32
  }
  func.func @transform_4(%arg0: i32) -> (i32, i32) {
    %c0_i32 = arith.constant 0 : i32
    %c0_i32_0 = arith.constant 0 : i32
    %c0_i32_1 = arith.constant 0 : i32
    return %c0_i32, %c0_i32_0 : i32, i32
  }
  func.func @transform_5(%arg0: i32) -> (i32, i32) {
    %c0_i32 = arith.constant 0 : i32
    %c0_i32_0 = arith.constant 0 : i32
    %c0_i32_1 = arith.constant 0 : i32
    return %c0_i32, %c0_i32_0 : i32, i32
  }
  func.func @transform_6(%arg0: i32) -> (i32, i32) {
    %c0_i32 = arith.constant 0 : i32
    %c0_i32_0 = arith.constant 0 : i32
    %c0_i32_1 = arith.constant 0 : i32
    return %c0_i32, %c0_i32_0 : i32, i32
  }
  func.func @transform_7(%arg0: i32) -> (i32, i32) {
    %c0_i32 = arith.constant 0 : i32
    %c0_i32_0 = arith.constant 0 : i32
    return %c0_i32, %arg0 : i32, i32
  }
}

</mosaic_0001>

<bundles_post_ra>
// kernel: tpu_custom_call.1
= control target key start
LH: loop header
LB: loop body
LE: loop exit
PB: predicated region body
PF: predicated region fallthrough
CT: control target
= control target key end

     0   :  { %vm55_vm0 = vcmask 261120   ;;  %s1050_s0 = inlined_call_operand.vmem [shape: f32[128,32], index: 0, kind: input, shape index: {}]   ;;  %s1051_s1 = inlined_call_operand.vmem [shape: f32[32,128], index: 1, kind: input, shape index: {}]   ;;  %s1052_s2 = inlined_call_operand.vmem [shape: f32[1,128], index: 2, kind: input, shape index: {}]   ;;  %s1053_s3 = inlined_call_operand.vmem [shape: f32[128,128], index: 3, kind: input, shape index: {}]   ;;  %s1054_s4 = inlined_call_operand.vmem [shape: f32[1,128], index: 4, kind: input, shape index: {}]   ;;  %s1055_s5 = inlined_call_operand.vmem [shape: f32[1,128], index: 5, kind: input, shape index: {}]   ;;  %s1056_s6 = inlined_call_operand.<no memory space> [shape: f32[1,1], index: 6, kind: input, shape index: {}]   ;;  %s1057_s7 = inlined_call_operand.hbm [shape: f32[1,128], index: 7, kind: output, shape index: {}]  }
   0x1   :  { %v44_v0 = vld [vmem:[%s1051_s1] sm:$0xff]  ;;  %v45_v1 = vld [vmem:[%s1051_s1 + $0x8] sm:$0xff]  ;;  %v46_v2 = vld [vmem:[%s1051_s1 + $0x10] sm:$0xff] }
   0x2   :  { %v754_v3 = vpack.c.bf16 %v45_v1, %v44_v0  ;;  %v47_v4 = vld [vmem:[%s1051_s1 + $0x18] sm:$0xff]  ;;  %v28_v5 = vld [vmem:[%s1050_s0] sm:$0xff]  ;;  %v266_v8 = vld [vmem:[%s1053_s3 + $0x8] sm:$0xff] }
   0x3   :  { %v758_v6 = vpack.c.bf16 %v47_v4, %v46_v2  ;;  %639 = vmatprep.mubr.msk.f32.mxu1 %vm55_vm0, %v28_v5  ;;  %v265_v7 = vld [vmem:[%s1053_s3] sm:$0xff]  ;;  %v267_v9 = vld [vmem:[%s1053_s3 + $0x10] sm:$0xff]  ;;  %v268_v10 = vld [vmem:[%s1053_s3 + $0x18] sm:$0xff] }
   0x4   :  { %755 = vmatprep.subr.bf16.mxu1 %v754_v3  ;;  %v29_v11 = vld [vmem:[%s1050_s0 + $0x8] sm:$0xff]  ;;  %v762_v12 = vpack.c.bf16 %v266_v8, %v265_v7  ;;  %v30_v13 = vld [vmem:[%s1050_s0 + $0x10] sm:$0xff]  ;;  %v766_v14 = vpack.c.bf16 %v268_v10, %v267_v9  ;;  %v269_v15 = vld [vmem:[%s1053_s3 + $0x20] sm:$0xff] }
   0x5   :  { %757 = vmatpush3.bf16.msra.mxu1 %v754_v3  ;;  %v270_v16 = vld [vmem:[%s1053_s3 + $0x28] sm:$0xff] }
   0x6   :  { %759 = vmatprep.subr.bf16.mxu1 %v758_v6 }
   0x9   :  { %761 = vmatpush3.bf16.msra.mxu1 %v758_v6 }
   0xa   :  { %763 = vmatprep.subr.bf16.mxu1 %v762_v12 }
   0xc   :  { %640 = vmatmul.mubr.msk.f32.vlgmr.msra.gmra.mrb[0].mxu1 %vm55_vm0, %v29_v11 }
   0xd   :  { %13 = vsyncpa [#allocation4], 0  ;;  %642 = vmatprep.mubr.msk.f32.mxu1 %vm55_vm0, %v30_v13  ;;  %v31_v17 = vld [vmem:[%s1050_s0 + $0x18] sm:$0xff]  ;;  %765 = vmatpush3.bf16.msra.mxu1 %v762_v12  ;;  %v32_v18 = vld [vmem:[%s1050_s0 + $0x20] sm:$0xff]  ;;  %v770_v19 = vpack.c.bf16 %v270_v16, %v269_v15  ;;  %vm851_vm1 = vmmov 0   ;;  %s853_s28 = smov [#allocation3]  }
   0xe   :  { %767 = vmatprep.subr.bf16.mxu1 %v766_v14  ;;  %v271_v20 = vld [vmem:[%s1053_s3 + $0x30] sm:$0xff]  ;;  %v272_v21 = vld [vmem:[%s1053_s3 + $0x38] sm:$0xff]  ;;  %v33_v22 = vld [vmem:[%s1050_s0 + $0x28] sm:$0xff]  ;;  %s535_s29 = sshll.u32 %s853_s28, 4  ;;  %s536_s29 = int_to_ptr.vmem [resolvable:$true] %s535_s29 }
   0xf   :  { %v34_v23 = vld [vmem:[%s1050_s0 + $0x30] sm:$0xff]  ;;  %v774_v24 = vpack.c.bf16 %v272_v21, %v271_v20  ;;  %v273_v25 = vld [vmem:[%s1053_s3 + $0x40] sm:$0xff]  ;;  %v274_v26 = vld [vmem:[%s1053_s3 + $0x48] sm:$0xff]  ;;  %s826_s30 = scalar_lea.vmem %s536_s29, 16  ;;  %p831_p1 = scmp.lt.s32.totalorder %s536_s29, %s536_s29 }
  0x10   :  { %643 = vmatmul.mubr.msk.f32.gmra.mrb[2].mxu1 %vm55_vm0, %v31_v17  ;;  %v35_v27 = vld [vmem:[%s1050_s0 + $0x38] sm:$0xff]  ;;  %v36_v28 = vld [vmem:[%s1050_s0 + $0x40] sm:$0xff]  ;;  %v778_v29 = vpack.c.bf16 %v274_v26, %v273_v25  ;;  %v275_v30 = vld [vmem:[%s1053_s3 + $0x50] sm:$0xff]  ;;  %p827_p0 = scmp.ne.s32.totalorder %s536_s29, %s826_s30 }
  0x11   :  { %645 = vmatprep.mubr.msk.f32.mxu1 %vm55_vm0, %v32_v18  ;;  %769 = vmatpush3.bf16.msra.mxu1 %v766_v14  ;;  %v276_v31 = vld [vmem:[%s1053_s3 + $0x58] sm:$0xff]  ;;  %v37_v32 = vld [vmem:[%s1050_s0 + $0x48] sm:$0xff]  ;;  %v38_v33 = vld [vmem:[%s1050_s0 + $0x50] sm:$0xff] }
  0x12   :  { %771 = vmatprep.subr.bf16.mxu1 %v770_v19  ;;  %v782_v34 = vpack.c.bf16 %v276_v31, %v275_v30  ;;  %v277_v35 = vld [vmem:[%s1053_s3 + $0x60] sm:$0xff]  ;;  %v278_v36 = vld [vmem:[%s1053_s3 + $0x68] sm:$0xff]  ;;  %v39_v37 = vld [vmem:[%s1050_s0 + $0x58] sm:$0xff]  ;;  %v850_v31 = vmov 0.0|0.0  }
  0x13   :  { %v40_v38 = vld [vmem:[%s1050_s0 + $0x60] sm:$0xff]  ;;  %v786_v39 = vpack.c.bf16 %v278_v36, %v277_v35  ;;  %v41_v40 = vld [vmem:[%s1050_s0 + $0x68] sm:$0xff]  ;;  %v42_v41 = vld [vmem:[%s1050_s0 + $0x70] sm:$0xff]  ;;  %794 = vmatprep.subr.bf16.mxu0 %v850_v31 }
  0x14   :  { %646 = vmatmul.mubr.msk.f32.gmra.mrb[4].mxu1 %vm55_vm0, %v33_v22  ;;  %v43_v42 = vld [vmem:[%s1050_s0 + $0x78] sm:$0xff]  ;;  %v279_v43 = vld [vmem:[%s1053_s3 + $0x70] sm:$0xff]  ;;  %v543_v46 = vld [vmem:[%s1052_s2] ss:$0 sm:$0xff] }
  0x15   :  { %648 = vmatprep.mubr.msk.f32.mxu1 %vm55_vm0, %v34_v23  ;;  %773 = vmatpush3.bf16.msra.mxu1 %v770_v19  ;;  %v280_v44 = vld [vmem:[%s1053_s3 + $0x78] sm:$0xff] }
  0x16   :  { %775 = vmatprep.subr.bf16.mxu1 %v774_v24  ;;  %v790_v45 = vpack.c.bf16 %v280_v44, %v279_v43 }
  0x18   :  { %649 = vmatmul.mubr.msk.f32.gmra.mrb[6].mxu1 %vm55_vm0, %v35_v27 }
  0x19   :  { %651 = vmatprep.mubr.msk.f32.mxu1 %vm55_vm0, %v36_v28  ;;  %777 = vmatpush3.bf16.msra.mxu1 %v774_v24 }
  0x1a   :  { %779 = vmatprep.subr.bf16.mxu1 %v778_v29 }
  0x1c   :  { %652 = vmatmul.mubr.msk.f32.gmra.mrb[8].mxu1 %vm55_vm0, %v37_v32  ;;  %v852_v32 = vmov 0.0  }
  0x1d   :  { %654 = vmatprep.mubr.msk.f32.mxu1 %vm55_vm0, %v38_v33  ;;  %781 = vmatpush3.bf16.msra.mxu1 %v778_v29  ;;  %v560_v33 = vld [vmem:[%s1054_s4] ss:$0 sm:$0xff] }
  0x1e   :  { %783 = vmatprep.subr.bf16.mxu1 %v782_v34  ;;  %751 = vmatprep.mubr.msk.f32.mxu0 %vm851_vm1, %v852_v32 }
  0x20   :  { %655 = vmatmul.mubr.msk.f32.gmra.mrb[10].mxu1 %vm55_vm0, %v39_v37 }
  0x21   :  { %657 = vmatprep.mubr.msk.f32.mxu1 %vm55_vm0, %v40_v38  ;;  %785 = vmatpush3.bf16.msra.mxu1 %v782_v34 }
  0x22   :  { %787 = vmatprep.subr.bf16.mxu1 %v786_v39 }
  0x24   :  { %658 = vmatmul.mubr.msk.f32.gmra.mrb[12].mxu1 %vm55_vm0, %v41_v40 }
  0x25   :  { %660 = vmatprep.mubr.msk.f32.mxu1 %vm55_vm0, %v42_v41  ;;  %789 = vmatpush3.bf16.msra.mxu1 %v786_v39 }
  0x26   :  { %791 = vmatprep.subr.bf16.mxu1 %v790_v45 }
  0x28   :  { %661 = vmatmul.mubr.msk.f32.gmra.mrb[14].mxu1 %vm55_vm0, %v43_v42 }
  0x29   :  { %793 = vmatpush3.bf16.msra.mxu1 %v790_v45 }
  0xdf   :  { %v641_v47 = vpop.f32.mrb[0].mxu1 }
  0xe0   :  { %v176_v48 = vadd.f32 %v641_v47, %v543_v46  ;;  %v170_v49 = vpop.f32.mrb[1].mxu1 }
  0xe1   :  { %v171_v50 = vadd.f32 %v543_v46, %v170_v49 }
  0xe2   :  { %v250_v53 = vmax.f32 %v176_v48, 0.0 }
  0xe3   :  { %v249_v51 = vmax.f32 %v171_v50, 0.0  ;;  %v644_v52 = vpop.f32.mrb[2].mxu1 }
  0xe4   :  { %v186_v54 = vadd.f32 %v644_v52, %v543_v46  ;;  %v180_v55 = vpop.f32.mrb[3].mxu1 }
  0xe5   :  { %v181_v56 = vadd.f32 %v543_v46, %v180_v55  ;;  %695 = vmatprep.mubr.f32.mxu1 %v249_v51 }
  0xe6   :  { %v252_v57 = vmax.f32 %v186_v54, 0.0  ;;  %696 = vmatmul.mubr.f32.vlgmr.msra.gmra.mrb[16].mxu1 %v250_v53 }
  0xe7   :  { %v251_v58 = vmax.f32 %v181_v56, 0.0  ;;  %v647_v59 = vpop.f32.mrb[4].mxu1 }
  0xe8   :  { %v196_v60 = vadd.f32 %v647_v59, %v543_v46  ;;  %v190_v61 = vpop.f32.mrb[5].mxu1 }
  0xe9   :  { %698 = vmatprep.mubr.f32.mxu1 %v251_v58  ;;  %v191_v62 = vadd.f32 %v543_v46, %v190_v61 }
  0xea   :  { %699 = vmatmul.mubr.f32.gmra.mrb[18].mxu1 %v252_v57  ;;  %v254_v63 = vmax.f32 %v196_v60, 0.0 }
  0xeb   :  { %v253_v0 = vmax.f32 %v191_v62, 0.0  ;;  %v650_v1 = vpop.f32.mrb[6].mxu1 }
  0xec   :  { %v206_v2 = vadd.f32 %v650_v1, %v543_v46  ;;  %v200_v3 = vpop.f32.mrb[7].mxu1 }
  0xed   :  { %701 = vmatprep.mubr.f32.mxu1 %v253_v0  ;;  %v201_v4 = vadd.f32 %v543_v46, %v200_v3 }
  0xee   :  { %702 = vmatmul.mubr.f32.gmra.mrb[20].mxu1 %v254_v63  ;;  %v256_v5 = vmax.f32 %v206_v2, 0.0 }
  0xef   :  { %v255_v6 = vmax.f32 %v201_v4, 0.0  ;;  %v653_v7 = vpop.f32.mrb[8].mxu1 }
  0xf0   :  { %v216_v8 = vadd.f32 %v653_v7, %v543_v46  ;;  %v210_v9 = vpop.f32.mrb[9].mxu1 }
  0xf1   :  { %704 = vmatprep.mubr.f32.mxu1 %v255_v6  ;;  %v211_v10 = vadd.f32 %v543_v46, %v210_v9 }
  0xf2   :  { %705 = vmatmul.mubr.f32.gmra.mrb[22].mxu1 %v256_v5  ;;  %v258_v11 = vmax.f32 %v216_v8, 0.0 }
  0xf3   :  { %v257_v12 = vmax.f32 %v211_v10, 0.0  ;;  %v656_v13 = vpop.f32.mrb[10].mxu1 }
  0xf4   :  { %v226_v14 = vadd.f32 %v656_v13, %v543_v46  ;;  %v220_v15 = vpop.f32.mrb[11].mxu1 }
  0xf5   :  { %707 = vmatprep.mubr.f32.mxu1 %v257_v12  ;;  %v221_v16 = vadd.f32 %v543_v46, %v220_v15 }
  0xf6   :  { %708 = vmatmul.mubr.f32.gmra.mrb[24].mxu1 %v258_v11  ;;  %v260_v17 = vmax.f32 %v226_v14, 0.0 }
  0xf7   :  { %v259_v18 = vmax.f32 %v221_v16, 0.0  ;;  %v659_v19 = vpop.f32.mrb[12].mxu1 }
  0xf8   :  { %v236_v20 = vadd.f32 %v659_v19, %v543_v46  ;;  %v230_v21 = vpop.f32.mrb[13].mxu1 }
  0xf9   :  { %710 = vmatprep.mubr.f32.mxu1 %v259_v18  ;;  %v231_v22 = vadd.f32 %v543_v46, %v230_v21 }
  0xfa   :  { %711 = vmatmul.mubr.f32.gmra.mrb[26].mxu1 %v260_v17  ;;  %v262_v23 = vmax.f32 %v236_v20, 0.0 }
  0xfb   :  { %v261_v24 = vmax.f32 %v231_v22, 0.0  ;;  %v662_v25 = vpop.f32.mrb[14].mxu1 }
  0xfc   :  { %v246_v26 = vadd.f32 %v662_v25, %v543_v46  ;;  %v240_v27 = vpop.f32.mrb[15].mxu1 }
  0xfd   :  { %713 = vmatprep.mubr.f32.mxu1 %v261_v24  ;;  %v241_v28 = vadd.f32 %v543_v46, %v240_v27  ;;  %v451_v27 = vstv %s1056_s6 }
  0xfe   :  { %714 = vmatmul.mubr.f32.gmra.mrb[28].mxu1 %v262_v23  ;;  %v264_v29 = vmax.f32 %v246_v26, 0.0  ;;  %v449_v26 = vld [vmem:[%s1055_s5] sm:$0x1]  ;;  %s830_s5 = scalar_lea.vmem %s536_s29, 32 }
  0xff   :  { %v263_v30 = vmax.f32 %v241_v28, 0.0  ;;  %p832_p2 = scmp.lt.s32.totalorder %s830_s5, %s826_s30 }
 0x101   :  { %716 = vmatprep.mubr.f32.mxu1 %v263_v30  ;;  %p833_p3 = por %p832_p2, %p831_p1 }
 0x102   :  { %717 = vmatmul.mubr.f32.gmra.mrb[30].mxu1 %v264_v29 }
 0x103   :  { %p834_p4 = pnand %p833_p3, %p827_p0 }
 0x1b9   :  { %v697_v34 = vpop.f32.mrb[16].mxu1 }
 0x1ba   :  { %v360_v35 = vadd.f32 %v697_v34, %v560_v33  ;;  %v354_v36 = vpop.f32.mrb[17].mxu1 }
 0x1bb   :  { %v355_v37 = vadd.f32 %v560_v33, %v354_v36 }
 0x1bc   :  { %v434_v38 = vmax.f32 %v360_v35, 0.0 }
 0x1bd   :  { %v433_v39 = vmax.f32 %v355_v37, 0.0  ;;  %v700_v40 = vpop.f32.mrb[18].mxu1 }
 0x1be   :  { %v370_v41 = vadd.f32 %v700_v40, %v560_v33  ;;  %v364_v42 = vpop.f32.mrb[19].mxu1 }
 0x1bf   :  { %v365_v43 = vadd.f32 %v560_v33, %v364_v42  ;;  %v795_v44 = vpack.c.bf16 %v434_v38, %v433_v39 }
 0x1c0   :  { %v436_v45 = vmax.f32 %v370_v41, 0.0 }
 0x1c1   :  { %v435_v46 = vmax.f32 %v365_v43, 0.0  ;;  %796 = vmatpush3.bf16.xpose.msra.mxu0 %v795_v44  ;;  %v703_v47 = vpop.f32.mrb[20].mxu1 }
 0x1c2   :  { %v380_v48 = vadd.f32 %v703_v47, %v560_v33  ;;  %v374_v49 = vpop.f32.mrb[21].mxu1  ;;  %797 = vmatprep.subr.bf16.mxu0 %v850_v31 }
 0x1c3   :  { %v798_v50 = vpack.c.bf16 %v436_v45, %v435_v46  ;;  %v375_v51 = vadd.f32 %v560_v33, %v374_v49 }
 0x1c4   :  { %v438_v52 = vmax.f32 %v380_v48, 0.0 }
 0x1c5   :  { %v437_v53 = vmax.f32 %v375_v51, 0.0  ;;  %v706_v54 = vpop.f32.mrb[22].mxu1 }
 0x1c6   :  { %v390_v55 = vadd.f32 %v706_v54, %v560_v33  ;;  %v384_v56 = vpop.f32.mrb[23].mxu1 }
 0x1c7   :  { %v801_v57 = vpack.c.bf16 %v438_v52, %v437_v53  ;;  %v385_v58 = vadd.f32 %v560_v33, %v384_v56 }
 0x1c8   :  { %v440_v59 = vmax.f32 %v390_v55, 0.0 }
 0x1c9   :  { %799 = vmatpush3.bf16.xpose.msra.mxu0 %v798_v50  ;;  %v439_v60 = vmax.f32 %v385_v58, 0.0  ;;  %v709_v61 = vpop.f32.mrb[24].mxu1 }
 0x1ca   :  { %800 = vmatprep.subr.bf16.mxu0 %v850_v31  ;;  %v400_v62 = vadd.f32 %v709_v61, %v560_v33  ;;  %v394_v63 = vpop.f32.mrb[25].mxu1 }
 0x1cb   :  { %v804_v0 = vpack.c.bf16 %v440_v59, %v439_v60  ;;  %v395_v1 = vadd.f32 %v560_v33, %v394_v63 }
 0x1cc   :  { %v442_v2 = vmax.f32 %v400_v62, 0.0 }
 0x1cd   :  { %v441_v3 = vmax.f32 %v395_v1, 0.0  ;;  %v712_v4 = vpop.f32.mrb[26].mxu1 }
 0x1ce   :  { %v410_v5 = vadd.f32 %v712_v4, %v560_v33  ;;  %v404_v6 = vpop.f32.mrb[27].mxu1 }
 0x1cf   :  { %v807_v7 = vpack.c.bf16 %v442_v2, %v441_v3  ;;  %v405_v8 = vadd.f32 %v560_v33, %v404_v6 }
 0x1d0   :  { %v444_v9 = vmax.f32 %v410_v5, 0.0 }
 0x1d1   :  { %802 = vmatpush3.bf16.xpose.msra.mxu0 %v801_v57  ;;  %v443_v10 = vmax.f32 %v405_v8, 0.0  ;;  %v715_v11 = vpop.f32.mrb[28].mxu1 }
 0x1d2   :  { %803 = vmatprep.subr.bf16.mxu0 %v850_v31  ;;  %v420_v12 = vadd.f32 %v715_v11, %v560_v33  ;;  %v414_v13 = vpop.f32.mrb[29].mxu1 }
 0x1d3   :  { %v810_v14 = vpack.c.bf16 %v444_v9, %v443_v10  ;;  %v415_v15 = vadd.f32 %v560_v33, %v414_v13 }
 0x1d4   :  { %v446_v16 = vmax.f32 %v420_v12, 0.0 }
 0x1d5   :  { %v445_v17 = vmax.f32 %v415_v15, 0.0  ;;  %v718_v18 = vpop.f32.mrb[30].mxu1 }
 0x1d6   :  { %v430_v19 = vadd.f32 %v718_v18, %v560_v33  ;;  %v424_v20 = vpop.f32.mrb[31].mxu1 }
 0x1d7   :  { %v813_v21 = vpack.c.bf16 %v446_v16, %v445_v17  ;;  %v425_v22 = vadd.f32 %v560_v33, %v424_v20 }
 0x1d8   :  { %v448_v23 = vmax.f32 %v430_v19, 0.0 }
 0x1d9   :  { %805 = vmatpush3.bf16.xpose.msra.mxu0 %v804_v0  ;;  %v447_v24 = vmax.f32 %v425_v22, 0.0 }
 0x1da   :  { %806 = vmatprep.subr.bf16.mxu0 %v850_v31 }
 0x1db   :  { %v816_v25 = vpack.c.bf16 %v448_v23, %v447_v24 }
 0x1e1   :  { %808 = vmatpush3.bf16.xpose.msra.mxu0 %v807_v7 }
 0x1e2   :  { %809 = vmatprep.subr.bf16.mxu0 %v850_v31 }
 0x1e9   :  { %811 = vmatpush3.bf16.xpose.msra.mxu0 %v810_v14 }
 0x1ea   :  { %812 = vmatprep.subr.bf16.mxu0 %v850_v31 }
 0x1f1   :  { %814 = vmatpush3.bf16.xpose.msra.mxu0 %v813_v21 }
 0x1f2   :  { %815 = vmatprep.subr.bf16.mxu0 %v850_v31 }
 0x1f9   :  { %817 = vmatpush3.bf16.xpose.msra.mxu0 %v816_v25 }
 0x200   :  { %752 = vmatmul.mubr.f32.vlgmr.msra.gmra.mrb[0].mxu0 %v449_v26 }
 0x2d3   :  { %v518_v28 = vpop.f32.mrb[0].mxu0 }
 0x2d4   :  { %v519_v29 = vadd.f32 %v518_v28, %v451_v27  ;;  %v753_v30 = vpop.f32.mrb[1].mxu0 }
 0x2d6   :  { %v561_v32 = vmul.f32 -1.442695, %v519_v29 }
 0x2d8   :  { %822 = vpow2.f32 %v561_v32 }
 0x2e2   :  { %v823_v33 = vpop.eup %822 }
 0x2e3   :  { %v525_v34 = vadd.f32 1.0, %v823_v33 }
 0x2e5   :  { %824 = vrcp.f32 %v525_v34 }
 0x2ef   :  { %v825_v31 = vpop.eup %824 }
 0x2f0   :  { %528 = vst [vmem:[#allocation3] sm:$0x1] %v825_v31 }
 0x2f1   :  { %837 = shalt.err (!%p834_p4)
}
 0x2f2   :  { %s838_s9 = scalar_lea.hbm %s1057_s7, 16 }
 0x2f3   :  { %p839_p5 = scmp.ne.s32.totalorder %s1057_s7, %s838_s9  ;;  %p842_p6 = scmp.lt.u32.totalorder %s838_s9, %s1057_s7 }
 0x2f5   :  { %p844_p7 = pnand %p842_p6, %p839_p5 }
 0x2f7   :  { %847 = shalt.err (!%p844_p7)
}
 0x2f8   :  { %538 = dma.vmem_to_hbm [thread:$0]  %s536_s29, 16, %s1057_s7, [#allocation4]  }
 0x2f9   :  { %848 = dma.done.wait [#allocation4], 16  }
 0x2fa   :  { %849 = vsyncadd [#allocation4], 4294967280 }
 0x2fb   :  { %542 = vsyncpa [#allocation4], 1 }

</bundles_post_ra>
